<compile_context>
chip_gen: v6e
topology: v6e:2x2x1
jax: 0.10.0
libtpu: 0.0.40
codegen_flags: <defaults>
</compile_context>

<pallas_src>
import functools

import jax
import jax.numpy as jnp
from jax.experimental import pallas as pl
from jax.experimental.pallas import tpu as pltpu

HIDDEN = 64      # fc1 output features (fixed by the PyTorch module)
SUBLANE = 8      # TPU sublane width: row (batch) dim padded to a multiple of 8
TM_MAX = 2048    # max rows per grid step (mem-bound kernels want big tiles)


def _round_up(n, m):
    return ((n + m - 1) // m) * m


def _cdiv(a, b):
    return -(-a // b)


def actor_kernel(x_ref, w1_ref, b1_ref, w2_ref, b2_ref, out_ref):
    """(tm,in)@(in,64) + b1 -> ReLU -> @(64,out) + b2 -> softmax over last dim.

    Weights/x may be bf16; both matmuls accumulate in f32 (preferred_element_type)
    and the softmax is computed entirely in f32 with an exact divide.
    """
    x = x_ref[...]
    h = jnp.dot(x, w1_ref[...], preferred_element_type=jnp.float32)
    h = jnp.maximum(h + b1_ref[...], 0.0)                      # ReLU
    logits = jnp.dot(h.astype(w2_ref.dtype), w2_ref[...],
                     preferred_element_type=jnp.float32)
    logits = logits + b2_ref[...]
    m = jnp.max(logits, axis=-1, keepdims=True)
    e = jnp.exp(logits - m)
    denom = jnp.sum(e, axis=-1, keepdims=True)
    out_ref[...] = (e / denom).astype(out_ref.dtype)           # exact normalization


def init_actor_params(key, input_size, output_size):
    """nn.Linear-default init (uniform +/- 1/sqrt(fan_in)); weights stored [in, out]."""
    k1, k2, k3, k4 = jax.random.split(key, 4)
    lim1 = 1.0 / float(input_size) ** 0.5
    lim2 = 1.0 / float(HIDDEN) ** 0.5
    w1 = jax.random.uniform(k1, (input_size, HIDDEN), jnp.float32, -lim1, lim1)
    b1 = jax.random.uniform(k2, (HIDDEN,), jnp.float32, -lim1, lim1)
    w2 = jax.random.uniform(k3, (HIDDEN, output_size), jnp.float32, -lim2, lim2)
    b2 = jax.random.uniform(k4, (output_size,), jnp.float32, -lim2, lim2)
    return w1, b1, w2, b2


def pack_actor_params(w1, b1, w2, b2, param_dtype=jnp.bfloat16):
    """Cast weights to the MXU-native dtype (bf16 recommended on v5e/v6e/v7x).

    Biases stay f32 (they are added to f32 accumulators in-kernel) and are
    reshaped to (1, n) so they are 2-D VMEM blocks.
    """
    return (w1.astype(param_dtype),
            b1.reshape(1, -1).astype(jnp.float32),
            w2.astype(param_dtype),
            b2.reshape(1, -1).astype(jnp.float32))


@jax.jit
def _actor_forward_impl(states, w1, b1, w2, b2):
    m, input_size = states.shape
    output_size = w2.shape[1]

    # Row tiling: multiples of 8, >= 2 grid steps when m > 8 (so v7x's second
    # TensorCore gets work), big tiles (<= TM_MAX) to amortize per-step overhead.
    if m <= SUBLANE:
        tm = SUBLANE
    else:
        n_blk = max(2, _cdiv(m, TM_MAX))
        tm = _round_up(_cdiv(m, n_blk), SUBLANE)
    m_pad = _round_up(m, tm)
    n_blk = m_pad // tm

    # Cast once to the weight dtype; pad only the row dim (padded zero rows produce
    # a harmless uniform distribution and are sliced off below — never read them).
    x = states.astype(w1.dtype)
    if m_pad != m:
        x = jnp.pad(x, ((0, m_pad - m), (0, 0)))

    itemsize = lambda a: jnp.dtype(a.dtype).itemsize
    cost = pl.CostEstimate(
        flops=2 * m_pad * (input_size * HIDDEN + HIDDEN * output_size),
        transcendentals=m_pad * output_size,
        bytes_accessed=(m_pad * input_size * itemsize(x)
                        + w1.size * itemsize(w1) + b1.size * itemsize(b1)
                        + w2.size * itemsize(w2) + b2.size * itemsize(b2)
                        + m_pad * output_size * 4),
    )

    out = pl.pallas_call(
        actor_kernel,
        out_shape=jax.ShapeDtypeStruct((m_pad, output_size), jnp.float32),
        grid=(n_blk,),
        in_specs=[
            pl.BlockSpec((tm, input_size), lambda i: (i, 0)),
            pl.BlockSpec((input_size, HIDDEN), lambda i: (0, 0)),
            pl.BlockSpec((1, HIDDEN), lambda i: (0, 0)),
            pl.BlockSpec((HIDDEN, output_size), lambda i: (0, 0)),
            pl.BlockSpec((1, output_size), lambda i: (0, 0)),
        ],
        out_specs=pl.BlockSpec((tm, output_size), lambda i: (i, 0)),
        compiler_params=pltpu.CompilerParams(
            dimension_semantics=("parallel",)),   # megacore-shardable on v7x
        cost_estimate=cost,
    )(x, w1, b1, w2, b2)
    return out if m_pad == m else out[:m]


def actor_forward(state, w1, b1, w2, b2):
    """state: (input_size,) or (batch, input_size) -> action probabilities.

    Softmax is over the output features (== nn.Softmax(dim=0) on the module's
    1-D state); in the batched path it is applied per row (per state).
    """
    single = state.ndim == 1
    states = state[None, :] if single else state
    probs = _actor_forward_impl(states, w1, b1, w2, b2)
    return probs[0] if single else probs


def actor_forward_ref(state, w1, b1, w2, b2):
    h = jnp.maximum(state @ w1 + b1, 0.0)
    logits = h @ w2 + b2
    return jax.nn.softmax(logits, axis=-1)


if __name__ == "__main__":
    input_size, output_size = 32, 8

    key = jax.random.PRNGKey(0)
    pkey, skey, bkey = jax.random.split(key, 3)
    w1, b1, w2, b2 = init_actor_params(pkey, input_size, output_size)

    # bf16 weights are the recommended perf path on all generations (MXU-native);
    # f32 params kept for an exactness check against the reference.
    params_bf16 = pack_actor_params(w1, b1, w2, b2, param_dtype=jnp.bfloat16)
    params_f32 = pack_actor_params(w1, b1, w2, b2, param_dtype=jnp.float32)

    # Single state: matches the PyTorch module's usage (softmax over features).
    state = jax.random.normal(skey, (input_size,), dtype=jnp.float32)
    probs = actor_forward(state, *params_bf16)
    jax.block_until_ready(probs)
    ref = actor_forward_ref(state, w1, b1, w2, b2)
    assert probs.shape == (output_size,)
    assert jnp.allclose(jnp.sum(probs), 1.0, atol=1e-3)          # exact divide in-kernel
    assert jnp.allclose(probs, ref, atol=2e-2, rtol=2e-2)        # bf16 inputs, f32 accum

    # f32 parameter path: should match the reference almost exactly.
    probs_f32 = actor_forward(state, *params_f32)
    jax.block_until_ready(probs_f32)
    assert jnp.allclose(probs_f32, ref, atol=1e-5, rtol=1e-5)

    # Small batch: >= 2 row tiles -> both v7x TensorCores busy; softmax per state.
    batch = jax.random.normal(bkey, (16, input_size), dtype=jnp.float32)
    bprobs = actor_forward(batch, *params_bf16)
    jax.block_until_ready(bprobs)
    bref = jax.vmap(lambda s: actor_forward_ref(s, w1, b1, w2, b2))(batch)
    assert bprobs.shape == (16, output_size)
    assert jnp.allclose(bprobs, bref, atol=2e-2, rtol=2e-2)

    print("KERNEL_OK")
</pallas_src>

<mosaic_0001>
module attributes {stable_mosaic.version = 11 : i64} {
  func.func @actor_kernel(%arg0: i32, %arg1: memref<8x32xbf16, #tpu.memory_space<vmem>>, %arg2: memref<32x64xbf16, #tpu.memory_space<vmem>>, %arg3: memref<1x64xf32, #tpu.memory_space<vmem>>, %arg4: memref<64x8xbf16, #tpu.memory_space<vmem>>, %arg5: memref<1x8xf32, #tpu.memory_space<vmem>>, %arg6: memref<8x8xf32, #tpu.memory_space<vmem>>) attributes {dimension_semantics = [#tpu.dimension_semantics<parallel>], iteration_bounds = array<i64: 1>, scalar_prefetch = 0 : i64, scratch_operands = 0 : i64, tpu.core_type = #tpu.core_type<tc>, window_params = [{transform_indices = @transform_0, window_bounds = array<i64: 8, 32>}, {pipeline_mode = #tpu.pipeline_mode<synchronous>, transform_indices = @transform_1, window_bounds = array<i64: 32, 64>}, {pipeline_mode = #tpu.pipeline_mode<synchronous>, transform_indices = @transform_2, window_bounds = array<i64: 1, 64>}, {pipeline_mode = #tpu.pipeline_mode<synchronous>, transform_indices = @transform_3, window_bounds = array<i64: 64, 8>}, {pipeline_mode = #tpu.pipeline_mode<synchronous>, transform_indices = @transform_4, window_bounds = array<i64: 1, 8>}, {transform_indices = @transform_5, window_bounds = array<i64: 8, 8>}]} {
    %c0 = arith.constant 0 : index
    %c0_0 = arith.constant 0 : index
    %0 = vector.load %arg1[%c0, %c0_0] : memref<8x32xbf16, #tpu.memory_space<vmem>>, vector<8x32xbf16>
    %c0_1 = arith.constant 0 : index
    %c0_2 = arith.constant 0 : index
    %1 = vector.load %arg2[%c0_1, %c0_2] : memref<32x64xbf16, #tpu.memory_space<vmem>>, vector<32x64xbf16>
    %cst = arith.constant dense<0.000000e+00> : vector<8x64xf32>
    %2 = tpu.matmul %0, %1, %cst {dimension_numbers = #tpu.dot_dimension_numbers<[1], [0], [0], [1], [0, 0, 1, 1], [], []>} : vector<8x32xbf16>, vector<32x64xbf16>, vector<8x64xf32> -> vector<8x64xf32>
    %c0_3 = arith.constant 0 : index
    %c0_4 = arith.constant 0 : index
    %3 = vector.load %arg3[%c0_3, %c0_4] : memref<1x64xf32, #tpu.memory_space<vmem>>, vector<1x64xf32>
    %4 = vector.broadcast %3 : vector<1x64xf32> to vector<8x64xf32>
    %5 = arith.addf %2, %4 : vector<8x64xf32>
    %cst_5 = arith.constant 0.000000e+00 : f32
    %6 = vector.broadcast %cst_5 : f32 to vector<8x64xf32>
    %7 = arith.maximumf %5, %6 : vector<8x64xf32>
    %8 = arith.truncf %7 : vector<8x64xf32> to vector<8x64xbf16>
    %c0_6 = arith.constant 0 : index
    %c0_7 = arith.constant 0 : index
    %9 = vector.load %arg4[%c0_6, %c0_7] : memref<64x8xbf16, #tpu.memory_space<vmem>>, vector<64x8xbf16>
    %cst_8 = arith.constant dense<0.000000e+00> : vector<8x8xf32>
    %10 = tpu.matmul %8, %9, %cst_8 {dimension_numbers = #tpu.dot_dimension_numbers<[1], [0], [0], [1], [0, 0, 1, 1], [], []>} : vector<8x64xbf16>, vector<64x8xbf16>, vector<8x8xf32> -> vector<8x8xf32>
    %c0_9 = arith.constant 0 : index
    %c0_10 = arith.constant 0 : index
    %11 = vector.load %arg5[%c0_9, %c0_10] : memref<1x8xf32, #tpu.memory_space<vmem>>, vector<1x8xf32>
    %12 = vector.broadcast %11 : vector<1x8xf32> to vector<8x8xf32>
    %13 = arith.addf %10, %12 : vector<8x8xf32>
    %cst_11 = arith.constant dense<0xFF800000> : vector<8xf32>
    %14 = vector.multi_reduction <maximumf>, %13, %cst_11 [1] : vector<8x8xf32> to vector<8xf32>
    %15 = vector.shape_cast %14 : vector<8xf32> to vector<8x1xf32>
    %16 = vector.broadcast %15 : vector<8x1xf32> to vector<8x8xf32>
    %17 = arith.subf %13, %16 : vector<8x8xf32>
    %18 = math.exp %17 : vector<8x8xf32>
    %cst_12 = arith.constant dense<0.000000e+00> : vector<8xf32>
    %19 = vector.multi_reduction <add>, %18, %cst_12 [1] : vector<8x8xf32> to vector<8xf32>
    %20 = vector.shape_cast %19 : vector<8xf32> to vector<8x1xf32>
    %21 = vector.broadcast %20 : vector<8x1xf32> to vector<8x8xf32>
    %22 = arith.divf %18, %21 : vector<8x8xf32>
    %c0_13 = arith.constant 0 : index
    %c0_14 = arith.constant 0 : index
    %23 = vector.load %arg6[%c0_13, %c0_14] : memref<8x8xf32, #tpu.memory_space<vmem>>, vector<8x8xf32>
    tpu.vector_store %arg6[%c0_13, %c0_14], %22 {strides = array<i32>} : memref<8x8xf32, #tpu.memory_space<vmem>>, vector<8x8xf32>,
    return
  }
  func.func @transform_0(%arg0: i32) -> (i32, i32) {
    %c0_i32 = arith.constant 0 : i32
    %c0_i32_0 = arith.constant 0 : i32
    return %arg0, %c0_i32 : i32, i32
  }
  func.func @transform_1(%arg0: i32) -> (i32, i32) {
    %c0_i32 = arith.constant 0 : i32
    %c0_i32_0 = arith.constant 0 : i32
    %c0_i32_1 = arith.constant 0 : i32
    return %c0_i32, %c0_i32_0 : i32, i32
  }
  func.func @transform_2(%arg0: i32) -> (i32, i32) {
    %c0_i32 = arith.constant 0 : i32
    %c0_i32_0 = arith.constant 0 : i32
    %c0_i32_1 = arith.constant 0 : i32
    return %c0_i32, %c0_i32_0 : i32, i32
  }
  func.func @transform_3(%arg0: i32) -> (i32, i32) {
    %c0_i32 = arith.constant 0 : i32
    %c0_i32_0 = arith.constant 0 : i32
    %c0_i32_1 = arith.constant 0 : i32
    return %c0_i32, %c0_i32_0 : i32, i32
  }
  func.func @transform_4(%arg0: i32) -> (i32, i32) {
    %c0_i32 = arith.constant 0 : i32
    %c0_i32_0 = arith.constant 0 : i32
    %c0_i32_1 = arith.constant 0 : i32
    return %c0_i32, %c0_i32_0 : i32, i32
  }
  func.func @transform_5(%arg0: i32) -> (i32, i32) {
    %c0_i32 = arith.constant 0 : i32
    %c0_i32_0 = arith.constant 0 : i32
    return %arg0, %c0_i32 : i32, i32
  }
}

</mosaic_0001>

<bundles_post_ra>
// kernel: _actor_forward_impl.1
= control target key start
LH: loop header
LB: loop body
LE: loop exit
PB: predicated region body
PF: predicated region fallthrough
CT: control target
= control target key end

     0   :  { %v241_v0 = vmov 0.0   ;;  %vm242_vm0 = vmmov 0   ;;  %vm45_vm1 = vcmask 261120   ;;  %vm130_vm2 = vcmask 523264   ;;  %s306_s1 = inlined_call_operand.vmem [shape: bf16[32,64], index: 1, kind: input, shape index: {}]   ;;  %s307_s3 = inlined_call_operand.vmem [shape: bf16[64,8], index: 3, kind: input, shape index: {}]   ;;  %s308_s0 = inlined_call_operand.vmem [shape: bf16[8,32], index: 0, kind: input, shape index: {}]   ;;  %s309_s2 = inlined_call_operand.vmem [shape: f32[1,64], index: 2, kind: input, shape index: {}]   ;;  %s310_s4 = inlined_call_operand.vmem [shape: f32[1,8], index: 4, kind: input, shape index: {}]   ;;  %s311_s5 = inlined_call_operand.vmem [shape: f32[8,8], index: 5, kind: output, shape index: {}]  }
   0x1   :  { %209 = vmatprep.subr.bf16.mxu0 %v241_v0  ;;  %v231_v1 = vld [vmem:[%s306_s1 + $0x8] sm:$0xff]   ;;  %213 = vmatprep.mubr.msk.bf16.mxu0 %vm242_vm0, %v241_v0  ;;  %v232_v2 = vld [vmem:[%s306_s1] sm:$0xff]   ;;  %v233_v3 = vld [vmem:[%s307_s3 + $0x18] sm:$0xff]   ;;  %vm174_vm3 = vcmask 64512  }
   0x2   :  { %217 = vmatprep.subr.bf16.mxu1 %v241_v0  ;;  %225 = vmatprep.mubr.msk.bf16.mxu1 %vm242_vm0, %v241_v0  ;;  %v234_v4 = vld [vmem:[%s307_s3 + $0x10] sm:$0xff]   ;;  %v21_v5 = vld [vmem:[%s308_s0] sm:$0xf]  ;;  %v235_v6 = vld [vmem:[%s307_s3 + $0x8] sm:$0xff]  }
   0x3   :  { %210 = vmatpush3.bf16.msra.mxu0 %v231_v1  ;;  %218 = vmatpush3.bf16.msra.mxu1 %v233_v3  ;;  %v236_v7 = vld [vmem:[%s307_s3] sm:$0xff]  }
   0x4   :  { %211 = vmatprep.subr.bf16.mxu0 %v241_v0  ;;  %219 = vmatprep.subr.bf16.mxu1 %v241_v0  ;;  %v191_v8 = vld [vmem:[%s309_s2] ss:$0 sm:$0xff] }
   0x5   :  { %v195_v16 = vld [vmem:[%s310_s4] ss:$0 sm:$0xff] }
   0x7   :  { %212 = vmatpush3.bf16.msra.mxu0 %v232_v2  ;;  %220 = vmatpush3.bf16.msra.mxu1 %v234_v4 }
   0x8   :  { %221 = vmatprep.subr.bf16.mxu1 %v241_v0 }
   0xa   :  { %214 = vmatmul.mubr.msk.bf16.vlgmr.msra.gmra.mxu0 %vm45_vm1, %v21_v5 }
   0xb   :  { %222 = vmatpush3.bf16.msra.mxu1 %v235_v6 }
   0xc   :  { %223 = vmatprep.subr.bf16.mxu1 %v241_v0 }
   0xf   :  { %224 = vmatpush3.bf16.msra.mxu1 %v236_v7 }
  0xca   :  { %v83_v9 = vpop.f32.mrf.mxu0 }
  0xcb   :  { %v84_v10 = vadd.f32 %v191_v8, %v83_v9 }
  0xcc   :  { %v215_v11 = vpop.f32.mrf.mxu0 }
  0xcd   :  { %v89_v12 = vmax.f32 %v84_v10, 0.0 }
  0xce   :  { %v86_v13 = vpop.f32.mrf.mxu0 }
  0xcf   :  { %v90_v14 = vpack.c.bf16 %v89_v12, %v89_v12 }
  0xd0   :  { %v216_v15 = vpop.f32.mrf.mxu0 }
  0xd1   :  { %226 = vmatmul.mubr.msk.bf16.vlgmr.msra.gmra.mxu1 %vm130_vm2, %v90_v14 }
 0x191   :  { %v168_v17 = vpop.f32.mrf.mxu1 }
 0x192   :  { %v169_v18 = vadd.f32 %v195_v16, %v168_v17 }
 0x193   :  { %v227_v19 = vpop.f32.mrf.mxu1 }
 0x194   :  { %v175_v20 = vsel %vm174_vm3, %v169_v18, -inf }
 0x195   :  { %176 = vmax.xlane.f32.xlu0 %v175_v20  ;;  %v171_v21 = vpop.f32.mrf.mxu1 }
 0x197   :  { %v228_v22 = vpop.f32.mrf.mxu1 }
 0x21e   :  { %v177_v23 = vpop.xlane.xlu0 %176 }
 0x21f   :  { %v178_v24 = vsub.f32 %v169_v18, %v177_v23 }
 0x221   :  { %v179_v25 = vmul.f32 1.442695, %v178_v24 }
 0x223   :  { %237 = vpow2.f32 %v179_v25 }
 0x230   :  { %v238_v26 = vpop.eup %237 }
 0x231   :  { %v181_v27 = vsel %vm174_vm3, %v238_v26, 0.0 }
 0x232   :  { %182 = vadd.xlane.f32.xlu0 %v181_v27 }
 0x2bb   :  { %v183_v28 = vpop.xlane.xlu0 %182 }
 0x2bc   :  { %239 = vrcp.f32 %v183_v28 }
 0x2c9   :  { %v240_v29 = vpop.eup %239 }
 0x2ca   :  { %v185_v30 = vmul.f32 %v240_v29, %v238_v26 }
 0x2cc   :  { %186 = vst.msk [vmem:[%s311_s5] sm:$0xff] %vm174_vm3, %v185_v30 }

</bundles_post_ra>
